<compile_context>
chip_gen: v7x
topology: tpu7x:2x2x1
jax: 0.10.0
libtpu: 0.0.40
codegen_flags: <defaults>
</compile_context>

<pallas_src>
import functools

import jax
import jax.numpy as jnp
import numpy as np
from jax.experimental import pallas as pl
from jax.experimental.pallas import tpu as pltpu


def _round_up(x, m):
    return ((x + m - 1) // m) * m


# ----------------------------------------------------------------------------
# Fused encoder kernel: one tile of `tt` output timesteps, all batches.
# conv1+SiLU -> conv2+SiLU -> conv3(stride s)+SiLU -> Linear -> 5*tanh,
# each conv as a single matmul with M = B*tt (banded weights, stride folded
# into the per-row layout).
# ----------------------------------------------------------------------------
def _encoder_kernel(xblk_ref, srow_ref, off1_ref, off2_ref,
                    w1_ref, b1_ref, w2_ref, b2_ref, w3_ref, b3_ref,
                    wc_ref, bc_ref, o_ref, *, T, tt, s):
    """Block shapes (weights/offsets are full-array blocks):

    xblk_ref: (B, tt, RF)     per-output-step raw-signal window (RF=17)   f32
    srow_ref: (B*tt, 1)       int32: s * (local output step) per row
    off1_ref: (1, Q1*C1)      int32: conv1 global-position lane offsets
    off2_ref: (1, K3*C2)      int32: conv2 global-position lane offsets
    w1_ref  : (RF, Q1*C1)     banded conv1 weights (all 13 conv1 phases)   f32
    b1_ref  : (1, Q1*C1)
    w2_ref  : (Q1*C1, K3*C2)  banded conv2 weights (all 9 conv3 taps)      f32
    b2_ref  : (1, K3*C2)
    w3_ref  : (K3*C2, C3)     conv3 weights, stride folded into the row    f32
    b3_ref  : (1, C3)
    wc_ref  : (C3, NSp)       CRF linear weights, zero-padded to 128 lanes f32
    bc_ref  : (1, NSp)
    o_ref   : (B, tt, NSp)    scores tile, batch-major (-> TNC outside)    f32
    """
    B, _, rf = xblk_ref.shape
    bt = B * tt

    x = xblk_ref[...].reshape(bt, rf)                      # (B*tt, RF)

    t0 = pl.program_id(0) * tt                             # first output step of tile
    base = s * t0 + srow_ref[...]                          # (B*tt, 1) anchor position

    # ---- conv1 + SiLU + exact per-layer zero-padding mask (PyTorch semantics)
    pos1 = base + off1_ref[...]                            # (B*tt, Q1*C1)
    y1 = jnp.dot(x, w1_ref[...], preferred_element_type=jnp.float32) + b1_ref[...]
    y1 = y1 * jax.nn.sigmoid(y1)
    y1 = jnp.where(jnp.logical_and(pos1 >= 0, pos1 < T), y1, 0.0)

    # ---- conv2 + SiLU + mask (single K=Q1*C1 matmul, M = B*tt)
    pos2 = base + off2_ref[...]                            # (B*tt, K3*C2)
    y2 = jnp.dot(y1, w2_ref[...], preferred_element_type=jnp.float32) + b2_ref[...]
    y2 = y2 * jax.nn.sigmoid(y2)
    y2 = jnp.where(jnp.logical_and(pos2 >= 0, pos2 < T), y2, 0.0)

    # ---- conv3 (stride s folded into the row layout): single K=144 matmul
    y3 = jnp.dot(y2, w3_ref[...], preferred_element_type=jnp.float32) + b3_ref[...]
    y3 = y3 * jax.nn.sigmoid(y3)

    # ---- LinearCRFEncoder head: 5 * tanh(y3 @ Wc + bc), lane-dense store
    # NOTE: operands could be cast to bf16 for extra MXU throughput; the MXU
    # is far from the bottleneck here so f32 is kept for accuracy.
    z = jnp.dot(y3, wc_ref[...], preferred_element_type=jnp.float32) + bc_ref[...]
    o_ref[...] = (5.0 * jnp.tanh(z)).reshape(o_ref.shape).astype(o_ref.dtype)


# ----------------------------------------------------------------------------
# SeqdistModel (encoder forward)
# ----------------------------------------------------------------------------
class SeqdistModelPallas:
    """Pallas-TPU forward pass for bonito's SeqdistModel (CRF conv encoder)."""

    def __init__(self, params, n_base=4, state_len=2, tile_t=256):
        self.params = params
        self.alphabet = "NACGT"                            # seqdist.alphabet
        self.n_scores = (n_base ** state_len) * (n_base + 1)   # 80
        self.tile_t = int(tile_t)

        cfg = params["conv_cfg"]
        (w1, b1), (w2, b2), (w3, b3) = params["convs"]
        w1 = np.asarray(w1, np.float32); b1 = np.asarray(b1, np.float32)
        w2 = np.asarray(w2, np.float32); b2 = np.asarray(b2, np.float32)
        w3 = np.asarray(w3, np.float32); b3 = np.asarray(b3, np.float32)

        self.strides = tuple(s for (_, _, s, _) in cfg)
        self.pads = tuple(p for (_, _, _, p) in cfg)
        self.ks = (w1.shape[2], w2.shape[2], w3.shape[2])
        self.stride = int(np.prod(self.strides))           # get_stride(encoder)

        # fused kernel assumes the standard bonito head: two 'same' stride-1
        # convs followed by one strided conv
        assert self.strides[0] == 1 and self.strides[1] == 1
        assert 2 * self.pads[0] == self.ks[0] - 1
        assert 2 * self.pads[1] == self.ks[1] - 1

        ks1, ks2, ks3 = self.ks
        C1, C2, C3 = w1.shape[0], w2.shape[0], w3.shape[0]
        pad1, pad2, pad3 = self.pads

        # one conv3 output step needs Q1 conv1 outputs / RF raw samples
        self.Q1 = ks3 + ks2 - 1                            # 13
        self.RF = self.Q1 + ks1 - 1                        # 17 (receptive field)

        # ---- banded weight matrices: the whole conv stack becomes 4 matmuls
        w1b = np.zeros((self.RF, self.Q1 * C1), np.float32)
        w1t = w1[:, 0, :].T                                # (ks1, C1)
        for q in range(self.Q1):
            w1b[q:q + ks1, q * C1:(q + 1) * C1] = w1t

        w2b = np.zeros((self.Q1 * C1, ks3 * C2), np.float32)
        w2t = np.transpose(w2, (2, 1, 0)).reshape(ks2 * C1, C2)
        for k in range(ks3):
            w2b[k * C1:(k + ks2) * C1, k * C2:(k + 1) * C2] = w2t

        w3b = np.transpose(w3, (2, 1, 0)).reshape(ks3 * C2, C3)

        self.w1b = jnp.asarray(w1b)
        self.b1r = jnp.asarray(np.tile(b1, self.Q1)[None, :])
        self.w2b = jnp.asarray(w2b)
        self.b2r = jnp.asarray(np.tile(b2, ks3)[None, :])
        self.w3b = jnp.asarray(w3b)
        self.b3r = jnp.asarray(b3[None, :])

        # lane -> conv global-position offsets used by the padding masks
        self.off1 = jnp.asarray(
            (np.arange(self.Q1 * C1) // C1 - (pad2 + pad3)).astype(np.int32)[None, :])
        self.off2 = jnp.asarray(
            (np.arange(ks3 * C2) // C2 - pad3).astype(np.int32)[None, :])

        # CRF head: pad score dim 80 -> 128 so stores are lane-dense
        self.ns_pad = 128 * ((self.n_scores + 127) // 128)
        crf_w = np.zeros((C3, self.ns_pad), np.float32)
        crf_w[:, :self.n_scores] = np.asarray(params["crf_w"], np.float32)
        crf_b = np.zeros((1, self.ns_pad), np.float32)
        crf_b[0, :self.n_scores] = np.asarray(params["crf_b"], np.float32)
        self.crf_w = jnp.asarray(crf_w)
        self.crf_b = jnp.asarray(crf_b)

        self._jit_forward = jax.jit(self._forward_impl)

    def forward(self, x_ncw):
        """x_ncw: (B, 1, T) float32 (PyTorch NCW). Returns (T_out, B, n_scores)."""
        return self._jit_forward(x_ncw)

    def _forward_impl(self, x_ncw):
        B, c_in, T = x_ncw.shape
        assert c_in == 1
        s = self.strides[2]
        ks3 = self.ks[2]
        pad3 = self.pads[2]
        pad_left = sum(self.pads)                          # 8

        T_out = (T + 2 * pad3 - ks3) // s + 1

        # Tile size: big rows for the MXU (M = B*tt), but keep >= 2 grid
        # points when possible (both v7x TensorCores); multiple of 8 so the
        # (B, tt, *) <-> (B*tt, *) reshapes are layout-preserving.
        tt = min(self.tile_t, T_out)
        if T_out >= 16:
            tt = min(tt, -(-T_out // 2))
        tt = _round_up(max(tt, 1), 8)
        n_tiles = pl.cdiv(T_out, tt)
        T_pad = n_tiles * tt

        # Per-output-step raw windows (single gather over the tiny raw signal;
        # ~3.4x duplication of the input, which is ~25x smaller than the output).
        Lpad = s * (T_pad - 1) + self.RF
        xp = jnp.pad(x_ncw[:, 0, :].astype(jnp.float32),
                     ((0, 0), (pad_left, Lpad - pad_left - T)))
        idx = s * jnp.arange(T_pad)[:, None] + jnp.arange(self.RF)[None, :]
        xblk = xp[:, idx]                                  # (B, T_pad, RF)

        # per-row local time (rows are batch-major: row = b*tt + t)
        srow = jnp.tile(s * jnp.arange(tt, dtype=jnp.int32), B)[:, None]

        kernel = functools.partial(_encoder_kernel, T=T, tt=tt, s=s)
        ns_pad = self.ns_pad

        out = pl.pallas_call(
            kernel,
            out_shape=jax.ShapeDtypeStruct((B, T_pad, ns_pad), jnp.float32),
            grid_spec=pltpu.PrefetchScalarGridSpec(
                num_scalar_prefetch=0,
                grid=(n_tiles,),
                in_specs=[
                    pl.BlockSpec((B, tt, self.RF), lambda i: (0, i, 0)),  # signal
                    pl.BlockSpec(srow.shape, lambda i: (0, 0)),
                    pl.BlockSpec(self.off1.shape, lambda i: (0, 0)),
                    pl.BlockSpec(self.off2.shape, lambda i: (0, 0)),
                    pl.BlockSpec(self.w1b.shape, lambda i: (0, 0)),
                    pl.BlockSpec(self.b1r.shape, lambda i: (0, 0)),
                    pl.BlockSpec(self.w2b.shape, lambda i: (0, 0)),
                    pl.BlockSpec(self.b2r.shape, lambda i: (0, 0)),
                    pl.BlockSpec(self.w3b.shape, lambda i: (0, 0)),
                    pl.BlockSpec(self.b3r.shape, lambda i: (0, 0)),
                    pl.BlockSpec(self.crf_w.shape, lambda i: (0, 0)),
                    pl.BlockSpec(self.crf_b.shape, lambda i: (0, 0)),
                ],
                out_specs=pl.BlockSpec((B, tt, ns_pad), lambda i: (0, i, 0)),
            ),
            compiler_params=pltpu.CompilerParams(
                # independent time tiles -> shards across the 2 TCs on v7x
                dimension_semantics=("parallel",),
                vmem_limit_bytes=32 * 1024 * 1024,
            ),
        )(xblk, srow, self.off1, self.off2,
          self.w1b, self.b1r, self.w2b, self.b2r,
          self.w3b, self.b3r, self.crf_w, self.crf_b)

        # batch-major dense blocks -> TNC, drop time padding and 80->128 lanes
        return jnp.transpose(out[:, :T_out, :self.n_scores], (1, 0, 2))


# ----------------------------------------------------------------------------
# Pure-JAX/f32 reference (exact PyTorch Conv1d / SiLU / CRF-head semantics)
# ----------------------------------------------------------------------------
def _reference_forward(params, x_ncw):
    def conv1d(x_btc, w_oik, b, stride, pad):
        Bn, Tn, Cin = x_btc.shape
        Cout, _, ks = w_oik.shape
        xp = jnp.pad(x_btc, ((0, 0), (pad, pad), (0, 0)))
        t_out = (Tn + 2 * pad - ks) // stride + 1
        idx = jnp.arange(t_out)[:, None] * stride + jnp.arange(ks)[None, :]
        patches = xp[:, idx, :]                            # (B, t_out, ks, Cin)
        w_mat = jnp.transpose(w_oik, (2, 1, 0)).reshape(ks * Cin, Cout)
        return patches.reshape(Bn, t_out, ks * Cin) @ w_mat + b

    x = jnp.transpose(x_ncw, (0, 2, 1))                    # NCW -> (B, T, C)
    for (w, b), (_, _, s, p) in zip(params["convs"], params["conv_cfg"]):
        x = conv1d(x, w, b, s, p)
        x = x * jax.nn.sigmoid(x)
    y = 5.0 * jnp.tanh(x @ params["crf_w"] + params["crf_b"])
    return jnp.transpose(y, (1, 0, 2))                     # (T_out, B, n_scores)


def init_params(key, n_base=4, state_len=2, features=64):
    # conv_cfg entries: (C_in, C_out, stride, padding); kernel sizes 5, 5, 9
    conv_cfg = [(1, 4, 1, 2), (4, 16, 1, 2), (16, features, 5, 4)]
    ksizes = [5, 5, 9]
    n_scores = (n_base ** state_len) * (n_base + 1)

    keys = jax.random.split(key, 2 * len(conv_cfg) + 2)
    convs = []
    for i, ((cin, cout, _, _), ks) in enumerate(zip(conv_cfg, ksizes)):
        fan_in = cin * ks
        w = jax.random.normal(keys[2 * i], (cout, cin, ks), jnp.float32)
        w = w / np.sqrt(fan_in)
        b = 0.01 * jax.random.normal(keys[2 * i + 1], (cout,), jnp.float32)
        convs.append((w, b))
    crf_w = jax.random.normal(keys[-2], (features, n_scores), jnp.float32)
    crf_w = crf_w / np.sqrt(features)
    crf_b = 0.01 * jax.random.normal(keys[-1], (n_scores,), jnp.float32)
    return {"convs": convs, "conv_cfg": conv_cfg, "crf_w": crf_w, "crf_b": crf_b}


if __name__ == "__main__":
    key = jax.random.PRNGKey(0)
    k_param, k_data1, k_data2 = jax.random.split(key, 3)

    params = init_params(k_param)
    model = SeqdistModelPallas(params)

    # -- test 1: small input, exercises 2 time tiles -------------------------
    B1, T1 = 2, 160
    x1 = jax.random.normal(k_data1, (B1, 1, T1), dtype=jnp.float32)
    out1 = model.forward(x1)                               # (32, 2, 80)
    jax.block_until_ready(out1)
    assert out1.shape == (T1 // model.stride, B1, model.n_scores), out1.shape
    ref1 = _reference_forward(params, x1)
    err1 = float(jnp.max(jnp.abs(out1 - ref1)))

    # -- test 2: longer odd-length input, 3 tiles + ragged last tile ---------
    B2, T2 = 3, 3001
    x2 = jax.random.normal(k_data2, (B2, 1, T2), dtype=jnp.float32)
    out2 = model.forward(x2)                               # (601, 3, 80)
    jax.block_until_ready(out2)
    ref2 = _reference_forward(params, x2)
    assert out2.shape == ref2.shape, (out2.shape, ref2.shape)
    err2 = float(jnp.max(jnp.abs(out2 - ref2)))

    assert bool(jnp.all(jnp.isfinite(out1))) and bool(jnp.all(jnp.isfinite(out2)))
    # tolerance covers a possible single-pass-bf16 MXU path for the f32 dots;
    # with full-precision f32 matmuls the error is ~1e-5.
    assert err1 < 2e-1, f"max |pallas - reference| (test 1) = {err1}"
    assert err2 < 2e-1, f"max |pallas - reference| (test 2) = {err2}"
    print("KERNEL_OK")
</pallas_src>

<mosaic_0001>
module attributes {stable_mosaic.version = 11 : i64} {
  func.func @_encoder_kernel(%arg0: i32, %arg1: memref<2x16x17xf32, #tpu.memory_space<vmem>>, %arg2: memref<32x1xi32, #tpu.memory_space<vmem>>, %arg3: memref<1x52xi32, #tpu.memory_space<vmem>>, %arg4: memref<1x144xi32, #tpu.memory_space<vmem>>, %arg5: memref<17x52xf32, #tpu.memory_space<vmem>>, %arg6: memref<1x52xf32, #tpu.memory_space<vmem>>, %arg7: memref<52x144xf32, #tpu.memory_space<vmem>>, %arg8: memref<1x144xf32, #tpu.memory_space<vmem>>, %arg9: memref<144x64xf32, #tpu.memory_space<vmem>>, %arg10: memref<1x64xf32, #tpu.memory_space<vmem>>, %arg11: memref<64x128xf32, #tpu.memory_space<vmem>>, %arg12: memref<1x128xf32, #tpu.memory_space<vmem>>, %arg13: memref<2x16x128xf32, #tpu.memory_space<vmem>>) attributes {dimension_semantics = [#tpu.dimension_semantics<parallel>], iteration_bounds = array<i64: 2>, scalar_prefetch = 0 : i64, scratch_operands = 0 : i64, tpu.core_type = #tpu.core_type<tc>, window_params = [{transform_indices = @transform_0, window_bounds = array<i64: 2, 16, 17>}, {pipeline_mode = #tpu.pipeline_mode<synchronous>, transform_indices = @transform_1, window_bounds = array<i64: 32, 1>}, {pipeline_mode = #tpu.pipeline_mode<synchronous>, transform_indices = @transform_2, window_bounds = array<i64: 1, 52>}, {pipeline_mode = #tpu.pipeline_mode<synchronous>, transform_indices = @transform_3, window_bounds = array<i64: 1, 144>}, {pipeline_mode = #tpu.pipeline_mode<synchronous>, transform_indices = @transform_4, window_bounds = array<i64: 17, 52>}, {pipeline_mode = #tpu.pipeline_mode<synchronous>, transform_indices = @transform_5, window_bounds = array<i64: 1, 52>}, {pipeline_mode = #tpu.pipeline_mode<synchronous>, transform_indices = @transform_6, window_bounds = array<i64: 52, 144>}, {pipeline_mode = #tpu.pipeline_mode<synchronous>, transform_indices = @transform_7, window_bounds = array<i64: 1, 144>}, {pipeline_mode = #tpu.pipeline_mode<synchronous>, transform_indices = @transform_8, window_bounds = array<i64: 144, 64>}, {pipeline_mode = #tpu.pipeline_mode<synchronous>, transform_indices = @transform_9, window_bounds = array<i64: 1, 64>}, {pipeline_mode = #tpu.pipeline_mode<synchronous>, transform_indices = @transform_10, window_bounds = array<i64: 64, 128>}, {pipeline_mode = #tpu.pipeline_mode<synchronous>, transform_indices = @transform_11, window_bounds = array<i64: 1, 128>}, {transform_indices = @transform_12, window_bounds = array<i64: 2, 16, 128>}]} {
    %c0 = arith.constant 0 : index
    %c0_0 = arith.constant 0 : index
    %c0_1 = arith.constant 0 : index
    %0 = vector.load %arg1[%c0, %c0_0, %c0_1] : memref<2x16x17xf32, #tpu.memory_space<vmem>>, vector<2x16x17xf32>
    %1 = vector.shape_cast %0 : vector<2x16x17xf32> to vector<32x17xf32>
    %c16_i32 = arith.constant 16 : i32
    %2 = arith.muli %arg0, %c16_i32 : i32
    %c5_i32 = arith.constant 5 : i32
    %3 = arith.muli %c5_i32, %2 : i32
    %c0_2 = arith.constant 0 : index
    %c0_3 = arith.constant 0 : index
    %4 = vector.load %arg2[%c0_2, %c0_3] : memref<32x1xi32, #tpu.memory_space<vmem>>, vector<32x1xi32>
    %5 = vector.broadcast %3 : i32 to vector<32x1xi32>
    %6 = arith.addi %5, %4 : vector<32x1xi32>
    %c0_4 = arith.constant 0 : index
    %c0_5 = arith.constant 0 : index
    %7 = vector.load %arg3[%c0_4, %c0_5] : memref<1x52xi32, #tpu.memory_space<vmem>>, vector<1x52xi32>
    %8 = vector.broadcast %6 : vector<32x1xi32> to vector<32x52xi32>
    %9 = vector.broadcast %7 : vector<1x52xi32> to vector<32x52xi32>
    %10 = arith.addi %8, %9 : vector<32x52xi32>
    %c0_6 = arith.constant 0 : index
    %c0_7 = arith.constant 0 : index
    %11 = vector.load %arg5[%c0_6, %c0_7] : memref<17x52xf32, #tpu.memory_space<vmem>>, vector<17x52xf32>
    %cst = arith.constant dense<0.000000e+00> : vector<32x52xf32>
    %12 = tpu.matmul %1, %11, %cst {dimension_numbers = #tpu.dot_dimension_numbers<[1], [0], [0], [1], [0, 0, 1, 1], [], []>} : vector<32x17xf32>, vector<17x52xf32>, vector<32x52xf32> -> vector<32x52xf32>
    %c0_8 = arith.constant 0 : index
    %c0_9 = arith.constant 0 : index
    %13 = vector.load %arg6[%c0_8, %c0_9] : memref<1x52xf32, #tpu.memory_space<vmem>>, vector<1x52xf32>
    %14 = vector.broadcast %13 : vector<1x52xf32> to vector<32x52xf32>
    %15 = arith.addf %12, %14 : vector<32x52xf32>
    %16 = arith.negf %15 : vector<32x52xf32>
    %17 = math.exp %16 : vector<32x52xf32>
    %cst_10 = arith.constant 1.000000e+00 : f32
    %18 = vector.broadcast %cst_10 : f32 to vector<32x52xf32>
    %19 = arith.addf %18, %17 : vector<32x52xf32>
    %20 = arith.divf %18, %19 : vector<32x52xf32>
    %21 = arith.mulf %15, %20 : vector<32x52xf32>
    %c0_i32 = arith.constant 0 : i32
    %22 = vector.broadcast %c0_i32 : i32 to vector<32x52xi32>
    %23 = arith.cmpi sge, %10, %22 : vector<32x52xi32>
    %c160_i32 = arith.constant 160 : i32
    %24 = vector.broadcast %c160_i32 : i32 to vector<32x52xi32>
    %25 = arith.cmpi slt, %10, %24 : vector<32x52xi32>
    %26 = arith.andi %23, %25 : vector<32x52xi1>
    %cst_11 = arith.constant 0.000000e+00 : f32
    %27 = vector.broadcast %cst_11 : f32 to vector<32x52xf32>
    %28 = arith.select %26, %21, %27 : vector<32x52xi1>, vector<32x52xf32>
    %c0_12 = arith.constant 0 : index
    %c0_13 = arith.constant 0 : index
    %29 = vector.load %arg4[%c0_12, %c0_13] : memref<1x144xi32, #tpu.memory_space<vmem>>, vector<1x144xi32>
    %30 = vector.broadcast %6 : vector<32x1xi32> to vector<32x144xi32>
    %31 = vector.broadcast %29 : vector<1x144xi32> to vector<32x144xi32>
    %32 = arith.addi %30, %31 : vector<32x144xi32>
    %c0_14 = arith.constant 0 : index
    %c0_15 = arith.constant 0 : index
    %33 = vector.load %arg7[%c0_14, %c0_15] : memref<52x144xf32, #tpu.memory_space<vmem>>, vector<52x144xf32>
    %cst_16 = arith.constant dense<0.000000e+00> : vector<32x144xf32>
    %34 = tpu.matmul %28, %33, %cst_16 {dimension_numbers = #tpu.dot_dimension_numbers<[1], [0], [0], [1], [0, 0, 1, 1], [], []>} : vector<32x52xf32>, vector<52x144xf32>, vector<32x144xf32> -> vector<32x144xf32>
    %c0_17 = arith.constant 0 : index
    %c0_18 = arith.constant 0 : index
    %35 = vector.load %arg8[%c0_17, %c0_18] : memref<1x144xf32, #tpu.memory_space<vmem>>, vector<1x144xf32>
    %36 = vector.broadcast %35 : vector<1x144xf32> to vector<32x144xf32>
    %37 = arith.addf %34, %36 : vector<32x144xf32>
    %38 = arith.negf %37 : vector<32x144xf32>
    %39 = math.exp %38 : vector<32x144xf32>
    %cst_19 = arith.constant 1.000000e+00 : f32
    %40 = vector.broadcast %cst_19 : f32 to vector<32x144xf32>
    %41 = arith.addf %40, %39 : vector<32x144xf32>
    %42 = arith.divf %40, %41 : vector<32x144xf32>
    %43 = arith.mulf %37, %42 : vector<32x144xf32>
    %c0_i32_20 = arith.constant 0 : i32
    %44 = vector.broadcast %c0_i32_20 : i32 to vector<32x144xi32>
    %45 = arith.cmpi sge, %32, %44 : vector<32x144xi32>
    %c160_i32_21 = arith.constant 160 : i32
    %46 = vector.broadcast %c160_i32_21 : i32 to vector<32x144xi32>
    %47 = arith.cmpi slt, %32, %46 : vector<32x144xi32>
    %48 = arith.andi %45, %47 : vector<32x144xi1>
    %cst_22 = arith.constant 0.000000e+00 : f32
    %49 = vector.broadcast %cst_22 : f32 to vector<32x144xf32>
    %50 = arith.select %48, %43, %49 : vector<32x144xi1>, vector<32x144xf32>
    %c0_23 = arith.constant 0 : index
    %c0_24 = arith.constant 0 : index
    %51 = vector.load %arg9[%c0_23, %c0_24] : memref<144x64xf32, #tpu.memory_space<vmem>>, vector<144x64xf32>
    %cst_25 = arith.constant dense<0.000000e+00> : vector<32x64xf32>
    %52 = tpu.matmul %50, %51, %cst_25 {dimension_numbers = #tpu.dot_dimension_numbers<[1], [0], [0], [1], [0, 0, 1, 1], [], []>} : vector<32x144xf32>, vector<144x64xf32>, vector<32x64xf32> -> vector<32x64xf32>
    %c0_26 = arith.constant 0 : index
    %c0_27 = arith.constant 0 : index
    %53 = vector.load %arg10[%c0_26, %c0_27] : memref<1x64xf32, #tpu.memory_space<vmem>>, vector<1x64xf32>
    %54 = vector.broadcast %53 : vector<1x64xf32> to vector<32x64xf32>
    %55 = arith.addf %52, %54 : vector<32x64xf32>
    %56 = arith.negf %55 : vector<32x64xf32>
    %57 = math.exp %56 : vector<32x64xf32>
    %cst_28 = arith.constant 1.000000e+00 : f32
    %58 = vector.broadcast %cst_28 : f32 to vector<32x64xf32>
    %59 = arith.addf %58, %57 : vector<32x64xf32>
    %60 = arith.divf %58, %59 : vector<32x64xf32>
    %61 = arith.mulf %55, %60 : vector<32x64xf32>
    %c0_29 = arith.constant 0 : index
    %c0_30 = arith.constant 0 : index
    %62 = vector.load %arg11[%c0_29, %c0_30] : memref<64x128xf32, #tpu.memory_space<vmem>>, vector<64x128xf32>
    %cst_31 = arith.constant dense<0.000000e+00> : vector<32x128xf32>
    %63 = tpu.matmul %61, %62, %cst_31 {dimension_numbers = #tpu.dot_dimension_numbers<[1], [0], [0], [1], [0, 0, 1, 1], [], []>} : vector<32x64xf32>, vector<64x128xf32>, vector<32x128xf32> -> vector<32x128xf32>
    %c0_32 = arith.constant 0 : index
    %c0_33 = arith.constant 0 : index
    %64 = vector.load %arg12[%c0_32, %c0_33] : memref<1x128xf32, #tpu.memory_space<vmem>>, vector<1x128xf32>
    %65 = vector.broadcast %64 : vector<1x128xf32> to vector<32x128xf32>
    %66 = arith.addf %63, %65 : vector<32x128xf32>
    %67 = math.tanh %66 : vector<32x128xf32>
    %cst_34 = arith.constant 5.000000e+00 : f32
    %68 = vector.broadcast %cst_34 : f32 to vector<32x128xf32>
    %69 = arith.mulf %68, %67 : vector<32x128xf32>
    %70 = vector.shape_cast %69 : vector<32x128xf32> to vector<2x16x128xf32>
    %c0_35 = arith.constant 0 : index
    %c0_36 = arith.constant 0 : index
    %c0_37 = arith.constant 0 : index
    %71 = vector.load %arg13[%c0_35, %c0_36, %c0_37] : memref<2x16x128xf32, #tpu.memory_space<vmem>>, vector<2x16x128xf32>
    tpu.vector_store %arg13[%c0_35, %c0_36, %c0_37], %70 {strides = array<i32>} : memref<2x16x128xf32, #tpu.memory_space<vmem>>, vector<2x16x128xf32>,
    return
  }
  func.func @transform_0(%arg0: i32) -> (i32, i32, i32) {
    %c0_i32 = arith.constant 0 : i32
    %c0_i32_0 = arith.constant 0 : i32
    %c0_i32_1 = arith.constant 0 : i32
    return %c0_i32, %arg0, %c0_i32_0 : i32, i32, i32
  }
  func.func @transform_1(%arg0: i32) -> (i32, i32) {
    %c0_i32 = arith.constant 0 : i32
    %c0_i32_0 = arith.constant 0 : i32
    %c0_i32_1 = arith.constant 0 : i32
    return %c0_i32, %c0_i32_0 : i32, i32
  }
  func.func @transform_2(%arg0: i32) -> (i32, i32) {
    %c0_i32 = arith.constant 0 : i32
    %c0_i32_0 = arith.constant 0 : i32
    %c0_i32_1 = arith.constant 0 : i32
    return %c0_i32, %c0_i32_0 : i32, i32
  }
  func.func @transform_3(%arg0: i32) -> (i32, i32) {
    %c0_i32 = arith.constant 0 : i32
    %c0_i32_0 = arith.constant 0 : i32
    %c0_i32_1 = arith.constant 0 : i32
    return %c0_i32, %c0_i32_0 : i32, i32
  }
  func.func @transform_4(%arg0: i32) -> (i32, i32) {
    %c0_i32 = arith.constant 0 : i32
    %c0_i32_0 = arith.constant 0 : i32
    %c0_i32_1 = arith.constant 0 : i32
    return %c0_i32, %c0_i32_0 : i32, i32
  }
  func.func @transform_5(%arg0: i32) -> (i32, i32) {
    %c0_i32 = arith.constant 0 : i32
    %c0_i32_0 = arith.constant 0 : i32
    %c0_i32_1 = arith.constant 0 : i32
    return %c0_i32, %c0_i32_0 : i32, i32
  }
  func.func @transform_6(%arg0: i32) -> (i32, i32) {
    %c0_i32 = arith.constant 0 : i32
    %c0_i32_0 = arith.constant 0 : i32
    %c0_i32_1 = arith.constant 0 : i32
    return %c0_i32, %c0_i32_0 : i32, i32
  }
  func.func @transform_7(%arg0: i32) -> (i32, i32) {
    %c0_i32 = arith.constant 0 : i32
    %c0_i32_0 = arith.constant 0 : i32
    %c0_i32_1 = arith.constant 0 : i32
    return %c0_i32, %c0_i32_0 : i32, i32
  }
  func.func @transform_8(%arg0: i32) -> (i32, i32) {
    %c0_i32 = arith.constant 0 : i32
    %c0_i32_0 = arith.constant 0 : i32
    %c0_i32_1 = arith.constant 0 : i32
    return %c0_i32, %c0_i32_0 : i32, i32
  }
  func.func @transform_9(%arg0: i32) -> (i32, i32) {
    %c0_i32 = arith.constant 0 : i32
    %c0_i32_0 = arith.constant 0 : i32
    %c0_i32_1 = arith.constant 0 : i32
    return %c0_i32, %c0_i32_0 : i32, i32
  }
  func.func @transform_10(%arg0: i32) -> (i32, i32) {
    %c0_i32 = arith.constant 0 : i32
    %c0_i32_0 = arith.constant 0 : i32
    %c0_i32_1 = arith.constant 0 : i32
    return %c0_i32, %c0_i32_0 : i32, i32
  }
  func.func @transform_11(%arg0: i32) -> (i32, i32) {
    %c0_i32 = arith.constant 0 : i32
    %c0_i32_0 = arith.constant 0 : i32
    %c0_i32_1 = arith.constant 0 : i32
    return %c0_i32, %c0_i32_0 : i32, i32
  }
  func.func @transform_12(%arg0: i32) -> (i32, i32, i32) {
    %c0_i32 = arith.constant 0 : i32
    %c0_i32_0 = arith.constant 0 : i32
    %c0_i32_1 = arith.constant 0 : i32
    return %c0_i32, %arg0, %c0_i32_0 : i32, i32, i32
  }
}

</mosaic_0001>

<bundles_post_ra>
// kernel: tile.8
= control target key start
LH: loop header
LB: loop body
LE: loop exit
PB: predicated region body
PF: predicated region fallthrough
CT: control target
= control target key end

     0   :  { %s22_s0 = inlined_call_operand.vmem [shape: s32[16], index: 0, kind: input, shape index: {}]   ;;  %s23_s1 = inlined_call_operand.vmem [shape: s32[2,16], index: 1, kind: output, shape index: {}]  }
   0x1   :  { %v4_v0 = vld [vmem:[%s22_s0] ss:$0 sm:$0xff] }
   0x2   :  { %5 = vst [vmem:[%s23_s1] sm:$0x3] %v4_v0 }

// kernel: tile.0
= control target key start
LH: loop header
LB: loop body
LE: loop exit
PB: predicated region body
PF: predicated region fallthrough
CT: control target
= control target key end

     0   :  { %s130_s8 = smov 125   ;;  %s131_s9 = smov 126   ;;  %vm7_vm0 = vcmask 7168   ;;  %s221_s0 = inlined_call_operand.vmem [shape: s32[2,16], index: 0, kind: input, shape index: {}]   ;;  %s222_s1 = inlined_call_operand.vmem [shape: s32[32,1], index: 1, kind: output, shape index: {}]  }
   0x1   :  { %v4_v0 = vld [vmem:[%s221_s0] sm:$0x3]  ;;  %s129_s0 = smov 127   ;;  %s132_s10 = smov 124  }
   0x2   :  { %5 = vst [vmem:[#allocation0] sm:$0x3] %v4_v0  ;;  %s133_s11 = smov 123   ;;  %s134_s12 = smov 122  }
   0x3   :  { %s135_s13 = smov 121   ;;  %s136_s14 = smov 120  }
   0x4   :  { %s137_s17 = smov 119   ;;  %s138_s18 = smov 118  }
   0x5   :  { %s139_s19 = smov 117   ;;  %s140_s20 = smov 116  }
   0x6   :  { %s141_s21 = smov 115   ;;  %s142_s22 = smov 114  }
   0x7   :  { %s143_s23 = smov 113  }
   0x9   :  { %v9_v1 = vld [vmem:[#allocation0] sm:$0x3]  }
   0xa   :  { %v21_v2 = vld [vmem:[#allocation0] sm:$0x3]   ;;  %10 = vrot.lane.b32.xlu0 %v9_v1, %s129_s0 }
   0xb   :  { %22 = vrot.lane.b32.xlu1 %v21_v2, %s130_s8  ;;  %v15_v3 = vld [vmem:[#allocation0] sm:$0x3]  }
   0xc   :  { %v27_v4 = vld [vmem:[#allocation0] sm:$0x3]  }
   0xd   :  { %v33_v5 = vld [vmem:[#allocation0] sm:$0x3]  }
   0xe   :  { %16 = vrot.lane.b32.xlu0 %v15_v3, %s131_s9  ;;  %v39_v6 = vld [vmem:[#allocation0] sm:$0x3]  }
   0xf   :  { %28 = vrot.lane.b32.xlu1 %v27_v4, %s132_s10  ;;  %v45_v7 = vld [vmem:[#allocation0] sm:$0x3]  }
  0x10   :  { %v51_v8 = vld [vmem:[#allocation0] sm:$0x3]  }
  0x11   :  { %v57_v9 = vld [vmem:[#allocation0] sm:$0x3]  }
  0x12   :  { %34 = vrot.lane.b32.xlu0 %v33_v5, %s133_s11  ;;  %v63_v10 = vld [vmem:[#allocation0] sm:$0x3]  }
  0x13   :  { %40 = vrot.lane.b32.xlu1 %v39_v6, %s134_s12  ;;  %v6_v11 = vld [vmem:[#allocation0] sm:$0x3]  }
  0x14   :  { %8 = vst.msk [vmem:[%s222_s1] ss:$16 sm:$0x3] %vm7_vm0, %v6_v11   ;;  %v69_v12 = vld [vmem:[#allocation0] sm:$0x3]  }
  0x15   :  { %v75_v13 = vld [vmem:[#allocation0] sm:$0x3]  }
  0x16   :  { %46 = vrot.lane.b32.xlu0 %v45_v7, %s135_s13  ;;  %v81_v14 = vld [vmem:[#allocation0] sm:$0x3]  }
  0x17   :  { %52 = vrot.lane.b32.xlu1 %v51_v8, %s136_s14  ;;  %v87_v15 = vld [vmem:[#allocation0] sm:$0x3]  }
  0x18   :  { %v93_v16 = vld [vmem:[#allocation0] sm:$0x3]  }
  0x1a   :  { %58 = vrot.lane.b32.xlu0 %v57_v9, %s137_s17 }
  0x1b   :  { %64 = vrot.lane.b32.xlu1 %v63_v10, %s138_s18 }
  0x1e   :  { %70 = vrot.lane.b32.xlu0 %v69_v12, %s139_s19 }
  0x1f   :  { %76 = vrot.lane.b32.xlu1 %v75_v13, %s140_s20 }
  0x22   :  { %82 = vrot.lane.b32.xlu0 %v81_v14, %s141_s21 }
  0x23   :  { %88 = vrot.lane.b32.xlu1 %v87_v15, %s142_s22 }
  0x26   :  { %94 = vrot.lane.b32.xlu0 %v93_v16, %s143_s23 }
  0x7c   :  { %v11_v17 = vpop.permute.xlu0 %10  }
  0x7d   :  { %v23_v18 = vpop.permute.xlu1 %22   ;;  %99 = vst.msk [vmem:[%s222_s1 + $0x1] ss:$16 sm:$0x3] %vm7_vm0, %v11_v17  }
  0x7e   :  { %101 = vst.msk [vmem:[%s222_s1 + $0x3] ss:$16 sm:$0x3] %vm7_vm0, %v23_v18  }
  0x80   :  { %v17_v19 = vpop.permute.xlu0 %16  }
  0x81   :  { %v29_v20 = vpop.permute.xlu1 %28   ;;  %100 = vst.msk [vmem:[%s222_s1 + $0x2] ss:$16 sm:$0x3] %vm7_vm0, %v17_v19  }
  0x82   :  { %102 = vst.msk [vmem:[%s222_s1 + $0x4] ss:$16 sm:$0x3] %vm7_vm0, %v29_v20  }
  0x84   :  { %v35_v21 = vpop.permute.xlu0 %34  }
  0x85   :  { %v41_v22 = vpop.permute.xlu1 %40   ;;  %103 = vst.msk [vmem:[%s222_s1 + $0x5] ss:$16 sm:$0x3] %vm7_vm0, %v35_v21  }
  0x86   :  { %104 = vst.msk [vmem:[%s222_s1 + $0x6] ss:$16 sm:$0x3] %vm7_vm0, %v41_v22  }
  0x88   :  { %v47_v23 = vpop.permute.xlu0 %46  }
  0x89   :  { %v53_v24 = vpop.permute.xlu1 %52   ;;  %105 = vst.msk [vmem:[%s222_s1 + $0x7] ss:$16 sm:$0x3] %vm7_vm0, %v47_v23  }
  0x8a   :  { %106 = vst.msk [vmem:[%s222_s1 + $0x8] ss:$16 sm:$0x3] %vm7_vm0, %v53_v24  }
  0x8c   :  { %v59_v25 = vpop.permute.xlu0 %58  }
  0x8d   :  { %v65_v26 = vpop.permute.xlu1 %64   ;;  %107 = vst.msk [vmem:[%s222_s1 + $0x9] ss:$16 sm:$0x3] %vm7_vm0, %v59_v25  }
  0x8e   :  { %108 = vst.msk [vmem:[%s222_s1 + $0xa] ss:$16 sm:$0x3] %vm7_vm0, %v65_v26  }
  0x90   :  { %v71_v27 = vpop.permute.xlu0 %70  }
  0x91   :  { %v77_v28 = vpop.permute.xlu1 %76   ;;  %109 = vst.msk [vmem:[%s222_s1 + $0xb] ss:$16 sm:$0x3] %vm7_vm0, %v71_v27  }
  0x92   :  { %110 = vst.msk [vmem:[%s222_s1 + $0xc] ss:$16 sm:$0x3] %vm7_vm0, %v77_v28  }
  0x94   :  { %v83_v29 = vpop.permute.xlu0 %82  }
  0x95   :  { %v89_v30 = vpop.permute.xlu1 %88   ;;  %111 = vst.msk [vmem:[%s222_s1 + $0xd] ss:$16 sm:$0x3] %vm7_vm0, %v83_v29  }
  0x96   :  { %112 = vst.msk [vmem:[%s222_s1 + $0xe] ss:$16 sm:$0x3] %vm7_vm0, %v89_v30  }
  0x98   :  { %v95_v31 = vpop.permute.xlu0 %94  }
  0x99   :  { %113 = vst.msk [vmem:[%s222_s1 + $0xf] ss:$16 sm:$0x3] %vm7_vm0, %v95_v31  }

// kernel: _forward_impl.1
= control target key start
LH: loop header
LB: loop body
LE: loop exit
PB: predicated region body
PF: predicated region fallthrough
CT: control target
= control target key end

     0   :  { %s1639_s21 = smov 0   ;;  %s1641_s22 = smov 0   ;;  %s1940_s0 = inlined_call_operand.vmem [shape: f32[2,32,17], index: 0, kind: input, shape index: {}]   ;;  %s1941_s1 = inlined_call_operand.vmem [shape: s32[32,1], index: 1, kind: input, shape index: {}]   ;;  %s1942_s2 = inlined_call_operand.vmem [shape: s32[1,52], index: 2, kind: input, shape index: {}]   ;;  %s1943_s3 = inlined_call_operand.vmem [shape: s32[1,144], index: 3, kind: input, shape index: {}]   ;;  %s1944_s4 = inlined_call_operand.vmem [shape: f32[17,52], index: 4, kind: input, shape index: {}]   ;;  %s1945_s5 = inlined_call_operand.vmem [shape: f32[1,52], index: 5, kind: input, shape index: {}]   ;;  %s1946_s6 = inlined_call_operand.vmem [shape: f32[52,144], index: 6, kind: input, shape index: {}]   ;;  %s1947_s7 = inlined_call_operand.vmem [shape: f32[1,144], index: 7, kind: input, shape index: {}]   ;;  %s1948_s8 = inlined_call_operand.vmem [shape: f32[144,64], index: 8, kind: input, shape index: {}]   ;;  %s1949_s9 = inlined_call_operand.vmem [shape: f32[1,64], index: 9, kind: input, shape index: {}]   ;;  %s1950_s10 = inlined_call_operand.vmem [shape: f32[64,128], index: 10, kind: input, shape index: {}]   ;;  %s1951_s11 = inlined_call_operand.vmem [shape: f32[1,128], index: 11, kind: input, shape index: {}]   ;;  %s1952_s12 = inlined_call_operand.vmem [shape: f32[2,32,128], index: 12, kind: output, shape index: {}]  }
   0x1   :  { %s1643_s23 = smov 0  }
   0x2 LB: > { %s1655_s24 = sadd.s32 4294967295, %s1569_s23   ;;  %s1658_s25 = sadd.s32 1, %s1569_s23   ;;  %s1569_s23 = sphi %s1643_s23, %s1956_s23   ;;  %s1565_s22 = sphi %s1641_s22, %s1955_s22   ;;  %s1561_s21 = sphi %s1639_s21, %s1954_s21  }
   0x3   : > { %s26_s26 = ssub.s32 %s1569_s23, %s1658_s25  ;;  %s29_s27 = sadd.s32 1, %s1565_s22 }
   0x4   : > { %p27_p0 = scmp.eq.s32.totalorder %s26_s26, 0  ;;  %p36_p1 = scmp.ne.s32.totalorder %s1565_s22, %s1561_s21 }
   0x5   : > { %p37_p2 = scmp.eq.s32.totalorder %s1569_s23, 0  ;;  %p297_p3 = scmp.eq.s32.totalorder %s1655_s24, 1 }
   0x6   : > { %s1668_s28 = scalar_select %p27_p0, %s1565_s22, %s29_s27  }
   0x7   : > { %p38_p4 = por %p37_p2, %p36_p1  ;;  %p1670_p5 = por %p297_p3, %p36_p1 }
   0x8   : > { %p1277_p6 = scmp.ge.s32.totalorder %s1569_s23, 2 }
   0xa   : > { %352 = sbr.rel (%p1277_p6) target bundleno = 24 (0x18), region = 60 }
  0x11   : > { %355 = sbr.rel (!%p38_p4) target bundleno = 24 (0x18), region = 64  ;;  %s357_s30 = sand.u32 (%p38_p4), 1, %s1565_s22  }
  0x12   : > { %s1332_s13 = sshll.u32 (%p38_p4), %s1569_s23, 4  ;;  %s1278_s14 = sshll.u32 (%p38_p4), %s357_s30, 5 }
  0x13   : > { %s362_s17 = scalar_lea.vmem (%p38_p4), %s1940_s0, %s1332_s13  ;;  %s359_s18 = scalar_lea.vmem (%p38_p4), [#allocation2], %s1278_s14 }
  0x14   : > { %v396_v0 = vld [vmem:[%s362_s17] sm:$0xff] (%p38_p4)  ;;  %v398_v1 = vld [vmem:[%s362_s17 + $0x8] sm:$0xff] (%p38_p4) }
  0x15   : > { %v400_v2 = vld [vmem:[%s362_s17 + $0x20] sm:$0xff] (%p38_p4)  ;;  %397 = vst [vmem:[%s359_s18] sm:$0xff] (%p38_p4), %v396_v0  ;;  %399 = vst [vmem:[%s359_s18 + $0x8] sm:$0xff] (%p38_p4), %v398_v1  ;;  %v402_v3 = vld [vmem:[%s362_s17 + $0x28] sm:$0xff] (%p38_p4) }
  0x16   : > { %401 = vst [vmem:[%s359_s18 + $0x10] sm:$0xff] (%p38_p4), %v400_v2  ;;  %403 = vst [vmem:[%s359_s18 + $0x18] sm:$0xff] (%p38_p4), %v402_v3 }
  0x18 PF: > { %p1281_p7 = scmp.ge.s32.totalorder %s1569_s23, 1  ;;  %p408_p8 = scmp.lt.s32.totalorder %s1569_s23, 3 }
  0x1a   : > { %p409_p9 = pnand %p1281_p7, %p408_p8 }
  0x1b   : > { %v492_v4 = vld [vmem:[%s1944_s4] sm:$0xff] (!%p409_p9)  ;;  %v493_v5 = vld [vmem:[%s1944_s4 + $0x8] sm:$0xff] (!%p409_p9)  ;;  %s415_s30 = sand.u32 (!%p409_p9), 1, %s1561_s21   ;;  %vm502_vm0 = vcmask (!%p409_p9), 138240   ;;  %s461_s14 = smul.u32 (!%p409_p9), 80, %s1655_s24  ;;  %v464_v8 = vld [vmem:[%s1941_s1 + $0x10] sm:$0xff] (!%p409_p9) }
  0x1c   : > { %412 = sbr.rel (%p409_p9) target bundleno = 1019 (0x3fb), region = 102  ;;  %v1387_v6 = vpack.c.bf16 (!%p409_p9), %v493_v5, %v492_v4  ;;  %s1689_s13 = sshll.u32 (!%p409_p9), %s415_s30, 5  ;;  %v462_v7 = vld [vmem:[%s1941_s1] sm:$0xff] (!%p409_p9)  ;;  %v494_v9 = vld [vmem:[%s1944_s4 + $0x10] sm:$0x1] (!%p409_p9)  ;;  %vm515_vm1 = vcmask (!%p409_p9), 1040384  }
  0x1d   : > { %v1571_v10 = vmov (!%p409_p9), 0   ;;  %s417_s21 = scalar_lea.vmem (!%p409_p9), [#allocation2], %s1689_s13  ;;  %v466_v12 = vstv (!%p409_p9), %s461_s14  ;;  %v463_v13 = vld [vmem:[%s1941_s1 + $0x8] sm:$0xff] (!%p409_p9)  ;;  %v465_v16 = vld [vmem:[%s1941_s1 + $0x18] sm:$0xff] (!%p409_p9)  ;;  %v665_v25 = vld [vmem:[%s1946_s6] sm:$0xff] (!%p409_p9)  ;;  %vm704_vm2 = vcmask (!%p409_p9), 1043456  }
  0x1e   : > { %1473 = vset.pattern.permute.xlu0 (!%p409_p9), %v1571_v10  ;;  %1474 = vset.pattern.permute.xlu1 (!%p409_p9), %v1571_v10  ;;  %v457_v11 = vld [vmem:[%s417_s21] sm:$0xff] (!%p409_p9)  ;;  %v467_v14 = vadd.s32 (!%p409_p9), %v466_v12, %v462_v7  ;;  %v469_v15 = vadd.s32 (!%p409_p9), %v466_v12, %v464_v8  ;;  %v458_v17 = vld [vmem:[%s417_s21 + $0x8] sm:$0xff] (!%p409_p9)  ;;  %v468_v18 = vadd.s32 (!%p409_p9), %v466_v12, %v463_v13  ;;  %v459_v19 = vld [vmem:[%s417_s21 + $0x10] sm:$0xff] (!%p409_p9)  ;;  %v1572_v42 = vmov (!%p409_p9), 0.0  }
  0x1f   : > { %1388 = vmatprep.subr.bf16.mxu1 (!%p409_p9), %v1387_v6  ;;  %1359 = vmatprep.mubr.msk.f32.mxu1 (!%p409_p9), %vm502_vm0, %v457_v11  ;;  %v470_v20 = vadd.s32 (!%p409_p9), %v466_v12, %v465_v16  ;;  %v460_v21 = vld [vmem:[%s417_s21 + $0x18] sm:$0xff] (!%p409_p9)  ;;  %v666_v22 = vld [vmem:[%s1946_s6 + $0x8] sm:$0xff] (!%p409_p9)  ;;  %v667_v26 = vld [vmem:[%s1946_s6 + $0x10] sm:$0xff] (!%p409_p9)  ;;  %v1573_v45 = vmov (!%p409_p9), 0.0|0.0   ;;  %vm691_vm6 = vcmask (!%p409_p9), 424960   ;;  %s454_s21 = scalar_lea.vmem (!%p409_p9), [#allocation3], %s1689_s13 }
  0x20   : > { %1390 = vmatpush3.bf16.msra.mxu1 (!%p409_p9), %v1387_v6  ;;  %473 = vperm.xlu0 (!%p409_p9), %1473, %v467_v14   ;;  %v668_v23 = vld [vmem:[%s1946_s6 + $0x18] sm:$0xff] (!%p409_p9)  ;;  %v1393_v27 = vpack.c.bf16 (!%p409_p9), %v667_v26, %v665_v25  ;;  %v670_v28 = vld [vmem:[%s1946_s6 + $0x28] sm:$0xff] (!%p409_p9)  ;;  %v669_v31 = vld [vmem:[%s1946_s6 + $0x20] sm:$0xff] (!%p409_p9) }
  0x21   : > { %1357 = vmatprep.subr.msk.mxu1 (!%p409_p9), %vm515_vm1, %v494_v9  ;;  %479 = vperm.xlu1 (!%p409_p9), %1474, %v469_v15   ;;  %v1391_v24 = vpack.c.bf16 (!%p409_p9), %v668_v23, %v666_v22  ;;  %v672_v29 = vld [vmem:[%s1946_s6 + $0x38] sm:$0xff] (!%p409_p9)  ;;  %v671_v32 = vld [vmem:[%s1946_s6 + $0x30] sm:$0xff] (!%p409_p9)  ;;  %v674_v34 = vld [vmem:[%s1946_s6 + $0x48] sm:$0xff] (!%p409_p9) }
  0x22   : > { %v1395_v30 = vpack.c.bf16 (!%p409_p9), %v672_v29, %v670_v28  ;;  %v1397_v33 = vpack.c.bf16 (!%p409_p9), %v671_v32, %v669_v31  ;;  %v676_v35 = vld [vmem:[%s1946_s6 + $0x58] sm:$0xff] (!%p409_p9)  ;;  %v673_v37 = vld [vmem:[%s1946_s6 + $0x40] sm:$0xff] (!%p409_p9)  ;;  %v675_v38 = vld [vmem:[%s1946_s6 + $0x50] sm:$0xff] (!%p409_p9)  ;;  %1403 = vmatprep.subr.bf16.mxu0 (!%p409_p9), %v1573_v45 }
  0x23   : > { %v1399_v36 = vpack.c.bf16 %v676_v35, %v674_v34  ;;  %v1401_v39 = vpack.c.bf16 %v675_v38, %v673_v37  ;;  %v678_v40 = vld [vmem:[%s1946_s6 + $0x68] sm:$0xf]  ;;  %v677_v41 = vld [vmem:[%s1946_s6 + $0x60] sm:$0xf]  ;;  %v890_v25 = vld [vmem:[%s1948_s8 + $0x10] sm:$0xff]  ;;  %s1333_s26 = sshll.u32 (%p1670_p5), %s1655_s24, 4 }
  0x24   : > { %1358 = vmatpush3.msk.msra.mxu1 %vm515_vm1, %v494_v9  ;;  %476 = vperm.xlu0 %1473, %v468_v18   ;;  %v888_v43 = vld [vmem:[%s1948_s8] sm:$0xff]  ;;  %v889_v44 = vld [vmem:[%s1948_s8 + $0x8] sm:$0xff]  ;;  %v891_v26 = vld [vmem:[%s1948_s8 + $0x18] sm:$0xff]  ;;  %s1173_s13 = scalar_lea.vmem (%p1670_p5), %s1952_s12, %s1333_s26 }
  0x25   : > { %1360 = vmatmul.mubr.msk.f32.vlgmr.msra.gmra.mrb[0].mxu1 %vm502_vm0, %v458_v17  ;;  %482 = vperm.xlu1 %1474, %v470_v20   ;;  %v1404_v46 = vpack.c.bf16 %v889_v44, %v888_v43  ;;  %v1285_v47 = vld [vmem:[%s1945_s5] ss:$0 sm:$0xff]  ;;  %v893_v29 = vld [vmem:[%s1948_s8 + $0x28] sm:$0xff]  ;;  %v894_v31 = vld [vmem:[%s1948_s8 + $0x30] sm:$0xff] }
  0x26   : > { %1362 = vmatprep.mubr.msk.f32.mxu1 %vm502_vm0, %v459_v19  ;;  %1392 = vmatprep.subr.bf16.mxu1 %v1391_v24  ;;  %v1284_v2 = vld [vmem:[%s1942_s2] ss:$0 sm:$0xff]  ;;  %v895_v32 = vld [vmem:[%s1948_s8 + $0x38] sm:$0xff]  ;;  %v897_v35 = vld [vmem:[%s1948_s8 + $0x48] sm:$0xff] }
  0x27   : > { %1394 = vmatpush1.bf16.msra.mxu1 %v1393_v27  ;;  %1405 = vmatpush1.bf16.msra.mxu0 %v1404_v46  ;;  %v1407_v27 = vpack.c.bf16 %v891_v26, %v890_v25  ;;  %v892_v28 = vld [vmem:[%s1948_s8 + $0x20] sm:$0xff]  ;;  %v898_v37 = vld [vmem:[%s1948_s8 + $0x50] sm:$0xff]  ;;  %v899_v38 = vld [vmem:[%s1948_s8 + $0x58] sm:$0xff] }
  0x28   : > { %1396 = vmatprep.subr.bf16.mxu1 %v1395_v30  ;;  %1406 = vmatprep.subr.bf16.mxu0 %v1573_v45  ;;  %v1410_v30 = vpack.c.bf16 %v893_v29, %v892_v28  ;;  %v896_v34 = vld [vmem:[%s1948_s8 + $0x40] sm:$0xff]  ;;  %v902_v43 = vld [vmem:[%s1948_s8 + $0x70] sm:$0xff]  ;;  %v903_v44 = vld [vmem:[%s1948_s8 + $0x78] sm:$0xff] }
  0x29   : > { %1363 = vmatmul.mubr.msk.f32.gmra.mrb[2].mxu1 %vm502_vm0, %v460_v21  ;;  %v1425_v46 = vpack.c.bf16 %v903_v44, %v902_v43 }
  0x2a   : > { %775 = vmatprep.mubr.f32.mxu1 %v1572_v42 }
  0x2b   : > { %1398 = vmatpush1.bf16.msra.mxu1 %v1397_v33  ;;  %1408 = vmatpush1.bf16.msra.mxu0 %v1407_v27  ;;  %v1413_v33 = vpack.c.bf16 %v895_v32, %v894_v31 }
  0x2c   : > { %1400 = vmatprep.subr.bf16.mxu1 %v1399_v36  ;;  %1409 = vmatprep.subr.bf16.mxu0 %v1573_v45  ;;  %v1416_v36 = vpack.c.bf16 %v897_v35, %v896_v34 }
  0x2f   : > { %1402 = vmatpush1.bf16.msra.mxu1 %v1401_v39  ;;  %1411 = vmatpush1.bf16.msra.mxu0 %v1410_v30  ;;  %v1419_v39 = vpack.c.bf16 %v899_v38, %v898_v37 }
  0x30   : > { %1295 = vmatprep.subr.msk.mxu1 %vm704_vm2, %v678_v40  ;;  %1412 = vmatprep.subr.bf16.mxu0 %v1573_v45  ;;  %v900_v40 = vld [vmem:[%s1948_s8 + $0x60] sm:$0xff] }
  0x33   : > { %1296 = vmatpush1.msk.msra.mxu1 %vm704_vm2, %v677_v41  ;;  %1414 = vmatpush1.bf16.msra.mxu0 %v1413_v33  ;;  %v901_v41 = vld [vmem:[%s1948_s8 + $0x68] sm:$0xff] }
  0x34   : > { %1415 = vmatprep.subr.bf16.mxu0 %v1573_v45 }
  0x37   : > { %1417 = vmatpush1.bf16.msra.mxu0 %v1416_v36 }
  0x38   : > { %1418 = vmatprep.subr.bf16.mxu0 %v1573_v45 }
  0x3b   : > { %1420 = vmatpush1.bf16.msra.mxu0 %v1419_v39 }
  0x3c   : > { %1421 = vmatprep.subr.bf16.mxu0 %v1573_v45 }
  0x9f   : > { %v1768_v0 = vpop.permute.xlu0 %473 }
  0xa0   : > { %v488_v5 = vadd.s32 %v1284_v2, %v1768_v0  ;;  %v1776_v8 = vpop.permute.xlu1 %479 }
  0xa1   : > { %v490_v13 = vadd.s32 %v1284_v2, %v1776_v8 }
  0xa2   : > { %vm632_vm3 = vcmp.ge.s32.totalorder %v488_v5, 0  ;;  %vm636_vm4 = vcmp.lt.s32.totalorder %v488_v5, 160 }
  0xa3   : > { %v1774_v7 = vpop.permute.xlu0 %476  ;;  %vm640_vm5 = vmand %vm632_vm3, %vm636_vm4  ;;  %vm634_vm10 = vcmp.ge.s32.totalorder %v490_v13, 0  ;;  %vm638_vm11 = vcmp.lt.s32.totalorder %v490_v13, 160  ;;  %vm913_vm3 = vcmask 130048  }
  0xa4   : > { %v489_v9 = vadd.s32 %v1284_v2, %v1774_v7  ;;  %v1780_v14 = vpop.permute.xlu1 %482  ;;  %vm642_vm12 = vmand %vm634_vm10, %vm638_vm11 }
  0xa5   : > { %v491_v18 = vadd.s32 %v1284_v2, %v1780_v14 }
  0xa6   : > { %vm633_vm7 = vcmp.ge.s32.totalorder %v489_v9, 0  ;;  %vm637_vm8 = vcmp.lt.s32.totalorder %v489_v9, 160 }
  0xa7   : > { %vm641_vm9 = vmand %vm633_vm7, %vm637_vm8  ;;  %vm635_vm13 = vcmp.ge.s32.totalorder %v491_v18, 0  ;;  %vm639_vm14 = vcmp.lt.s32.totalorder %v491_v18, 160 }
  0xa8   : > { %vm643_vm15 = vmand %vm635_vm13, %vm639_vm14 }
  0xf8   : > { %v1361_v48 = vpop.f32.mrb[0].mxu1 }
  0xf9   : > { %v591_v49 = vadd.f32 %v1361_v48, %v1285_v47  ;;  %v585_v50 = vpop.f32.mrb[1].mxu1  ;;  %v905_v48 = vld [vmem:[%s1948_s8 + $0x88] sm:$0xff] }
  0xfa   : > { %v586_v51 = vadd.f32 %v1285_v47, %v585_v50  ;;  %v649_v50 = vlaneseq }
  0xfb   : > { %v1292_v52 = vmul.f32 -1.442695, %v591_v49 }
  0xfc   : > { %v1291_v53 = vmul.f32 -1.442695, %v586_v51  ;;  %v1364_v54 = vpop.f32.mrb[2].mxu1 }
  0xfd   : > { %1475 = vpow2.f32 %v1292_v52  ;;  %v601_v55 = vadd.f32 %v1364_v54, %v1285_v47  ;;  %v595_v56 = vpop.f32.mrb[3].mxu1  ;;  %v679_v52 = vld [vmem:[%s1947_s7] sm:$0x3] }
  0xfe   : > { %1477 = vpow2.f32 %v1291_v53  ;;  %v596_v57 = vadd.f32 %v1285_v47, %v595_v56  ;;  %v904_v47 = vld [vmem:[%s1948_s8 + $0x80] sm:$0xff] }
  0xff   : > { %v1294_v58 = vmul.f32 -1.442695, %v601_v55 }
 0x100   : > { %v1293_v59 = vmul.f32 -1.442695, %v596_v57 }
 0x101   : > { %1479 = vpow2.f32 %v1294_v58 }
 0x102   : > { %1481 = vpow2.f32 %v1293_v59 }
 0x107   : > { %v1476_v60 = vpop.eup %1475 }
 0x108   : > { %v1478_v61 = vpop.eup %1477  ;;  %v617_v62 = vadd.f32 1.0, %v1476_v60 }
 0x109   : > { %v616_v63 = vadd.f32 1.0, %v1478_v61 }
 0x10a   : > { %1483 = vrcp.f32 %v617_v62 }
 0x10b   : > { %v1480_v1 = vpop.eup %1479  ;;  %1485 = vrcp.f32 %v616_v63 }
 0x10c   : > { %v1482_v3 = vpop.eup %1481  ;;  %v619_v6 = vadd.f32 1.0, %v1480_v1 }
 0x10d   : > { %v618_v4 = vadd.f32 1.0, %v1482_v3 }
 0x10f   : > { %1487 = vrcp.f32 %v618_v4 }
 0x110   : > { %1489 = vrcp.f32 %v619_v6 }
 0x114   : > { %v1484_v10 = vpop.eup %1483 }
 0x115   : > { %v1486_v11 = vpop.eup %1485  ;;  %v629_v15 = vmul.f32 %v1484_v10, %v591_v49  ;;  %v1428_v49 = vpack.c.bf16 %v905_v48, %v904_v47 }
 0x116   : > { %v628_v12 = vmul.f32 %v1486_v11, %v586_v51  ;;  %v650_v51 = vshrl.u32 %v649_v50, 7 }
 0x117   : > { %v645_v20 = vsel %vm641_vm9, %v629_v15, 0.0 }
 0x118   : > { %v644_v16 = vsel %vm640_vm5, %v628_v12, 0.0  ;;  %v651_v53 = vsub.s32 0, %v650_v51  ;;  %v655_v54 = vsub.s32 1, %v650_v51 }
 0x119   : > { %v1488_v17 = vpop.eup %1487  ;;  %1297 = vmatmul.mubr.msk.f32.vlgmr.msra.gmra.mrb[4].mxu1 %vm691_vm6, %v644_v16 }
 0x11a   : > { %781 = vmatprep.mubr.f32.mxu1 %v1572_v42  ;;  %v630_v19 = vmul.f32 %v1488_v17, %v596_v57  ;;  %v1490_v21 = vpop.eup %1489 }
 0x11b   : > { %v631_v22 = vmul.f32 %v1490_v21, %v601_v55  ;;  %v684_v55 = vrot.slane %v679_v52, %v651_v53 }
 0x11c   : > { %v646_v23 = vsel %vm642_vm12, %v630_v19, 0.0 }
 0x11d   : > { %1298 = vmatmul.mubr.msk.f32.gmra.mrb[6].mxu1 %vm691_vm6, %v645_v20  ;;  %v647_v24 = vsel %vm643_vm15, %v631_v22, 0.0 }
 0x11e   : > { %787 = vmatprep.mubr.f32.mxu1 %v1572_v42 }
 0x121   : > { %1299 = vmatmul.mubr.msk.f32.gmra.mrb[8].mxu1 %vm691_vm6, %v646_v23  ;;  %v648_v23 = vld [vmem:[%s1943_s3] sm:$0x3] }
 0x122   : > { %793 = vmatprep.mubr.f32.mxu1 %v1572_v42  ;;  %v1422_v42 = vpack.c.bf16 %v901_v41, %v900_v40  ;;  %v656_v27 = vrot.slane %v648_v23, %v655_v54  ;;  %v652_v29 = vrot.slane %v648_v23, %v651_v53 }
 0x124   : > { %1423 = vmatpush1.bf16.msra.mxu0 %v1422_v42  ;;  %v658_v33 = vadd.s32 %v656_v27, %v1768_v0  ;;  %v657_v35 = vadd.s32 %v652_v29, %v1768_v0  ;;  %v660_v38 = vadd.s32 %v656_v27, %v1774_v7  ;;  %v659_v43 = vadd.s32 %v652_v29, %v1774_v7 }
 0x125   : > { %1300 = vmatmul.mubr.msk.f32.gmra.mrb[10].mxu1 %vm691_vm6, %v647_v24  ;;  %1424 = vmatprep.subr.bf16.mxu0 %v1573_v45  ;;  %v662_v0 = vadd.s32 %v656_v27, %v1776_v8  ;;  %v661_v7 = vadd.s32 %v652_v29, %v1776_v8 }
 0x126   : > { %vm857_vm0 = vcmp.ge.s32.totalorder %v658_v33, 0  ;;  %vm865_vm1 = vcmp.lt.s32.totalorder %v658_v33, 160  ;;  %vm856_vm2 = vcmp.ge.s32.totalorder %v657_v35, 0  ;;  %vm864_vm4 = vcmp.lt.s32.totalorder %v657_v35, 160 }
 0x127   : > { %vm859_vm5 = vcmp.ge.s32.totalorder %v660_v38, 0  ;;  %vm873_vm6 = vmand %vm857_vm0, %vm865_vm1  ;;  %vm867_vm7 = vcmp.lt.s32.totalorder %v660_v38, 160  ;;  %vm858_vm9 = vcmp.ge.s32.totalorder %v659_v43, 0  ;;  %vm866_vm10 = vcmp.lt.s32.totalorder %v659_v43, 160 }
 0x128   : > { %1426 = vmatpush1.bf16.msra.mxu0 %v1425_v46  ;;  %vm872_vm8 = vmand %vm856_vm2, %vm864_vm4  ;;  %vm861_vm12 = vcmp.ge.s32.totalorder %v662_v0, 0  ;;  %vm869_vm13 = vcmp.lt.s32.totalorder %v662_v0, 160  ;;  %vm860_vm15 = vcmp.ge.s32.totalorder %v661_v7, 0  ;;  %vm868_vm0 = vcmp.lt.s32.totalorder %v661_v7, 160 }
 0x129   : > { %1427 = vmatprep.subr.bf16.mxu0 %v1573_v45  ;;  %v688_v45 = vrot.slane %v679_v52, %v655_v54  ;;  %vm875_vm11 = vmand %vm859_vm5, %vm867_vm7 }
 0x12a   : > { %vm874_vm14 = vmand %vm858_vm9, %vm866_vm10 }
 0x12b   : > { %vm877_vm1 = vmand %vm861_vm12, %vm869_vm13 }
 0x12c   : > { %1429 = vmatpush1.bf16.msra.mxu0 %v1428_v49  ;;  %vm876_vm2 = vmand %vm860_vm15, %vm868_vm0 }
 0x1ec   : > { %v777_v56 = vpop.f32.mrb[4].mxu1 }
 0x1ed   : > { %v1848_v57 = vadd.f32 %v777_v56, %v684_v55  ;;  %v779_v58 = vpop.f32.mrb[5].mxu1  ;;  %v663_v56 = vadd.s32 %v652_v29, %v1780_v14 }
 0x1ee   : > { %v780_v59 = vadd.f32 %v779_v58, %v688_v45 }
 0x1ef   : > { %v1301_v60 = vmul.f32 -1.442695, %v1848_v57  ;;  %vm870_vm7 = vcmp.lt.s32.totalorder %v663_v56, 160 }
 0x1f0   : > { %v1302_v61 = vmul.f32 -1.442695, %v780_v59  ;;  %v783_v62 = vpop.f32.mrb[6].mxu1 }
 0x1f1   : > { %1491 = vpow2.f32 %v1301_v60  ;;  %v1851_v63 = vadd.f32 %v783_v62, %v684_v55  ;;  %v785_v1 = vpop.f32.mrb[7].mxu1 }
 0x1f2   : > { %1493 = vpow2.f32 %v1302_v61  ;;  %v1853_v2 = vadd.f32 %v785_v1, %v688_v45  ;;  %v1040_v1 = vld [vmem:[%s1950_s10 + $0x8] sm:$0xff] }
 0x1f3   : > { %v1303_v3 = vmul.f32 -1.442695, %v1851_v63 }
 0x1f4   : > { %v1304_v4 = vmul.f32 -1.442695, %v1853_v2  ;;  %v789_v5 = vpop.f32.mrb[8].mxu1 }
 0x1f5   : > { %1495 = vpow2.f32 %v1303_v3  ;;  %v1857_v6 = vadd.f32 %v789_v5, %v684_v55  ;;  %v791_v9 = vpop.f32.mrb[9].mxu1  ;;  %v1041_v3 = vld [vmem:[%s1950_s10 + $0x10] sm:$0xff] }
 0x1f6   : > { %1497 = vpow2.f32 %v1304_v4  ;;  %v1859_v10 = vadd.f32 %v791_v9, %v688_v45  ;;  %v1042_v4 = vld [vmem:[%s1950_s10 + $0x18] sm:$0xff]  ;;  %v1044_v9 = vld [vmem:[%s1950_s10 + $0x28] sm:$0xff] }
 0x1f7   : > { %v1305_v11 = vmul.f32 -1.442695, %v1857_v6  ;;  %v1434_v5 = vpack.c.bf16 %v1042_v4, %v1041_v3 }
 0x1f8   : > { %v1306_v12 = vmul.f32 -1.442695, %v1859_v10  ;;  %v795_v13 = vpop.f32.mrb[10].mxu1 }
 0x1f9   : > { %1499 = vpow2.f32 %v1305_v11  ;;  %v1863_v15 = vadd.f32 %v795_v13, %v684_v55  ;;  %v797_v16 = vpop.f32.mrb[11].mxu1  ;;  %v1045_v11 = vld [vmem:[%s1950_s10 + $0x30] sm:$0xff] }
 0x1fa   : > { %1501 = vpow2.f32 %v1306_v12  ;;  %v1865_v17 = vadd.f32 %v797_v16, %v688_v45  ;;  %v664_v45 = vadd.s32 %v656_v27, %v1780_v14  ;;  %v1039_v14 = vld [vmem:[%s1950_s10] sm:$0xff]  ;;  %v1046_v12 = vld [vmem:[%s1950_s10 + $0x38] sm:$0xff] }
 0x1fb   : > { %v1492_v18 = vpop.eup %1491  ;;  %v1307_v19 = vmul.f32 -1.442695, %v1863_v15  ;;  %v1442_v13 = vpack.c.bf16 %v1046_v12, %v1045_v11 }
 0x1fc   : > { %v1494_v20 = vpop.eup %1493  ;;  %v824_v21 = vadd.f32 1.0, %v1492_v18  ;;  %v1308_v22 = vmul.f32 -1.442695, %v1865_v17  ;;  %vm863_vm4 = vcmp.ge.s32.totalorder %v664_v45, 0  ;;  %vm871_vm5 = vcmp.lt.s32.totalorder %v664_v45, 160 }
 0x1fd   : > { %v825_v24 = vadd.f32 1.0, %v1494_v20  ;;  %1503 = vpow2.f32 %v1307_v19 }
 0x1fe   : > { %1505 = vrcp.f32 %v824_v21 }
 0x1ff   : > { %v1496_v25 = vpop.eup %1495  ;;  %1507 = vrcp.f32 %v825_v24 }
 0x200   : > { %v1498_v26 = vpop.eup %1497  ;;  %v826_v28 = vadd.f32 1.0, %v1496_v25  ;;  %1509 = vpow2.f32 %v1308_v22 }
 0x201   : > { %v827_v30 = vadd.f32 1.0, %v1498_v26 }
 0x202   : > { %1511 = vrcp.f32 %v826_v28 }
 0x203   : > { %v1500_v31 = vpop.eup %1499  ;;  %1513 = vrcp.f32 %v827_v30 }
 0x204   : > { %v1502_v32 = vpop.eup %1501  ;;  %v828_v34 = vadd.f32 1.0, %v1500_v31 }
 0x205   : > { %v829_v36 = vadd.f32 1.0, %v1502_v32 }
 0x206   : > { %1515 = vrcp.f32 %v828_v34 }
 0x207   : > { %v1504_v37 = vpop.eup %1503  ;;  %1517 = vrcp.f32 %v829_v36 }
 0x208   : > { %v1506_v39 = vpop.eup %1505  ;;  %v830_v40 = vadd.f32 1.0, %v1504_v37 }
 0x209   : > { %v1508_v41 = vpop.eup %1507  ;;  %v848_v48 = vmul.f32 %v1506_v39, %v1848_v57 }
 0x20a   : > { %v1510_v42 = vpop.eup %1509  ;;  %v849_v44 = vmul.f32 %v1508_v41, %v780_v59  ;;  %1519 = vrcp.f32 %v830_v40 }
 0x20b   : > { %v831_v46 = vadd.f32 1.0, %v1510_v42 }
 0x20c   : > { %v1512_v47 = vpop.eup %1511  ;;  %v881_v49 = vsel %vm873_vm6, %v849_v44, 0.0  ;;  %vm862_vm6 = vcmp.ge.s32.totalorder %v663_v56, 0 }
 0x20d   : > { %v1514_v50 = vpop.eup %1513  ;;  %1521 = vrcp.f32 %v831_v46  ;;  %1310 = vmatprep.mubr.msk.f32.mxu0 %vm913_vm3, %v881_v49  ;;  %v850_v53 = vmul.f32 %v1512_v47, %v1851_v63  ;;  %vm878_vm9 = vmand %vm862_vm6, %vm870_vm7 }
 0x20e   : > { %v851_v51 = vmul.f32 %v1514_v50, %v1853_v2  ;;  %1311 = vmatmul.mubr.msk.f32.vlgmr.msra.gmra.mrb[0].mxu0 %vm872_vm8, %v848_v48  ;;  %vm879_vm8 = vmand %vm863_vm4, %vm871_vm5  ;;  %v1430_v2 = vpack.c.bf16 %v1040_v1, %v1039_v14  ;;  %v1322_v48 = vld [vmem:[%s1951_s11] ss:$0 sm:$0xff] }
 0x210   : > { %v1516_v52 = vpop.eup %1515  ;;  %v883_v54 = vsel %vm875_vm11, %v851_v51, 0.0  ;;  %1431 = vmatprep.subr.bf16.mxu1 %v1430_v2 }
 0x211   : > { %v1518_v55 = vpop.eup %1517  ;;  %1312 = vmatprep.mubr.msk.f32.mxu0 %vm913_vm3, %v883_v54  ;;  %v852_v57 = vmul.f32 %v1516_v52, %v1857_v6  ;;  %1433 = vmatpush3.bf16.msra.mxu1 %v1430_v2  ;;  %v1043_v6 = vld [vmem:[%s1950_s10 + $0x20] sm:$0xff] }
 0x212   : > { %v853_v8 = vmul.f32 %v1518_v55, %v1859_v10  ;;  %1313 = vmatmul.mubr.msk.f32.gmra.mrb[2].mxu0 %vm874_vm14, %v850_v53  ;;  %1435 = vmatprep.subr.bf16.mxu1 %v1434_v5  ;;  %v1438_v10 = vpack.c.bf16 %v1044_v9, %v1043_v6 }
 0x214   : > { %v885_v58 = vsel %vm877_vm1, %v853_v8, 0.0  ;;  %v1520_v59 = vpop.eup %1519 }
 0x215   : > { %1314 = vmatprep.mubr.msk.f32.mxu0 %vm913_vm3, %v885_v58  ;;  %v854_v62 = vmul.f32 %v1520_v59, %v1863_v15  ;;  %1437 = vmatpush3.bf16.msra.mxu1 %v1434_v5  ;;  %v1309_v15 = vld [vmem:[%s1949_s9] ss:$0 sm:$0xff] }
 0x216   : > { %1315 = vmatmul.mubr.msk.f32.gmra.mrb[4].mxu0 %vm876_vm2, %v852_v57  ;;  %1439 = vmatprep.subr.bf16.mxu1 %v1438_v10 }
 0x217   : > { %v1522_v60 = vpop.eup %1521 }
 0x218   : > { %v855_v61 = vmul.f32 %v1522_v60, %v1865_v17 }
 0x219   : > { %1441 = vmatpush3.bf16.msra.mxu1 %v1438_v10 }
 0x21a   : > { %v887_v63 = vsel %vm879_vm8, %v855_v61, 0.0  ;;  %1443 = vmatprep.subr.bf16.mxu1 %v1442_v13 }
 0x21b   : > { %1316 = vmatprep.mubr.msk.f32.mxu0 %vm913_vm3, %v887_v63  ;;  %vm1054_vm3 = vcmask 523264  }
 0x21c   : > { %1317 = vmatmul.mubr.msk.f32.gmra.mrb[6].mxu0 %vm878_vm9, %v854_v62 }
 0x21d   : > { %1445 = vmatpush3.bf16.msra.mxu1 %v1442_v13 }
 0x2e1   : > { %v992_v16 = vpop.f32.mrb[0].mxu0 }
 0x2e2   : > { %v993_v17 = vadd.f32 %v1309_v15, %v992_v16  ;;  %v994_v18 = vpop.f32.mrb[1].mxu0 }
 0x2e4   : > { %v1318_v19 = vmul.f32 -1.442695, %v993_v17 }
 0x2e5   : > { %v997_v20 = vpop.f32.mrb[2].mxu0 }
 0x2e6   : > { %1523 = vpow2.f32 %v1318_v19  ;;  %v998_v21 = vadd.f32 %v1309_v15, %v997_v20  ;;  %v999_v22 = vpop.f32.mrb[3].mxu0 }
 0x2e8   : > { %v1319_v23 = vmul.f32 -1.442695, %v998_v21 }
 0x2e9   : > { %v1002_v24 = vpop.f32.mrb[4].mxu0 }
 0x2ea   : > { %1525 = vpow2.f32 %v1319_v23  ;;  %v1003_v25 = vadd.f32 %v1309_v15, %v1002_v24  ;;  %v1004_v26 = vpop.f32.mrb[5].mxu0 }
 0x2ec   : > { %v1320_v27 = vmul.f32 -1.442695, %v1003_v25 }
 0x2ee   : > { %1527 = vpow2.f32 %v1320_v27 }
 0x2ef   : > { %v1007_v28 = vpop.f32.mrb[6].mxu0 }
 0x2f0   : > { %v1524_v29 = vpop.eup %1523  ;;  %v1008_v30 = vadd.f32 %v1309_v15, %v1007_v28  ;;  %v1009_v31 = vpop.f32.mrb[7].mxu0 }
 0x2f1   : > { %v1023_v32 = vadd.f32 1.0, %v1524_v29 }
 0x2f2   : > { %v1321_v33 = vmul.f32 -1.442695, %v1008_v30 }
 0x2f3   : > { %1529 = vrcp.f32 %v1023_v32 }
 0x2f4   : > { %v1526_v34 = vpop.eup %1525  ;;  %1531 = vpow2.f32 %v1321_v33 }
 0x2f5   : > { %v1024_v35 = vadd.f32 1.0, %v1526_v34 }
 0x2f7   : > { %1533 = vrcp.f32 %v1024_v35 }
 0x2f8   : > { %v1528_v36 = vpop.eup %1527 }
 0x2f9   : > { %v1025_v37 = vadd.f32 1.0, %v1528_v36 }
 0x2fb   : > { %1535 = vrcp.f32 %v1025_v37 }
 0x2fd   : > { %v1530_v38 = vpop.eup %1529 }
 0x2fe   : > { %v1532_v39 = vpop.eup %1531  ;;  %v1035_v40 = vmul.f32 %v1530_v38, %v993_v17 }
 0x2ff   : > { %v1026_v41 = vadd.f32 1.0, %v1532_v39 }
 0x300   : > { %1381 = vmatprep.mubr.msk.f32.mxu1 %vm1054_vm3, %v1035_v40 }
 0x301   : > { %v1534_v42 = vpop.eup %1533  ;;  %1537 = vrcp.f32 %v1026_v41 }
 0x302   : > { %v1036_v43 = vmul.f32 %v1534_v42, %v998_v21 }
 0x304   : > { %1382 = vmatmul.mubr.msk.f32.vlgmr.msra.gmra.mrb[12].mxu1 %vm1054_vm3, %v1036_v43 }
 0x305   : > { %v1536_v44 = vpop.eup %1535 }
 0x306   : > { %v1037_v0 = vmul.f32 %v1536_v44, %v1003_v25 }
 0x308   : > { %1384 = vmatprep.mubr.msk.f32.mxu1 %vm1054_vm3, %v1037_v0 }
 0x30b   : > { %v1538_v46 = vpop.eup %1537 }
 0x30c   : > { %v1038_v47 = vmul.f32 %v1538_v46, %v1008_v30 }
 0x30e   : > { %1385 = vmatmul.mubr.msk.f32.gmra.mrb[14].mxu1 %vm1054_vm3, %v1038_v47 }
 0x3d7   : > { %v1383_v49 = vpop.f32.mrb[12].mxu1 }
 0x3d8   : > { %v1139_v50 = vadd.f32 %v1383_v49, %v1322_v48  ;;  %v1133_v7 = vpop.f32.mrb[13].mxu1 }
 0x3d9   : > { %v1134_v51 = vadd.f32 %v1322_v48, %v1133_v7 }
 0x3da   : > { %1539 = vtanh.f32 %v1139_v50 }
 0x3db   : > { %1541 = vtanh.f32 %v1134_v51 }
 0x3e1   : > { %v1386_v52 = vpop.f32.mrb[14].mxu1 }
 0x3e2   : > { %v1149_v53 = vadd.f32 %v1386_v52, %v1322_v48  ;;  %v1143_v54 = vpop.f32.mrb[15].mxu1 }
 0x3e3   : > { %v1144_v55 = vadd.f32 %v1322_v48, %v1143_v54 }
 0x3e4   : > { %v1540_v45 = vpop.eup %1539  ;;  %1543 = vtanh.f32 %v1149_v53 }
 0x3e5   : > { %v1542_v8 = vpop.eup %1541  ;;  %v1157_v56 = vmul.f32 5.0, %v1540_v45  ;;  %1545 = vtanh.f32 %v1144_v55 }
 0x3e6   : > { %v1156_v57 = vmul.f32 5.0, %v1542_v8 }
 0x3e7   : > { %1161 = vst [vmem:[%s454_s21 + $0x8] sm:$0xff] %v1157_v56 }
 0x3e8   : > { %1160 = vst [vmem:[%s454_s21] sm:$0xff] %v1156_v57 }
 0x3ec   : > { %1170 = sbr.rel (!%p1670_p5) target bundleno = 1019 (0x3fb), region = 110 }
 0x3ee   : > { %v1544_v58 = vpop.eup %1543  ;;  %v1209_v63 = vld [vmem:[%s454_s21 + $0x8] sm:$0xff] (%p1670_p5) }
 0x3ef   : > { %v1546_v59 = vpop.eup %1545  ;;  %v1159_v60 = vmul.f32 5.0, %v1544_v58  ;;  %v1207_v62 = vld [vmem:[%s454_s21] sm:$0xff] (%p1670_p5)  ;;  %1210 = vst [vmem:[%s1173_s13 + $0x8] sm:$0xff] (%p1670_p5), %v1209_v63 }
 0x3f0   : > { %v1158_v61 = vmul.f32 5.0, %v1546_v59  ;;  %1208 = vst [vmem:[%s1173_s13] sm:$0xff] (%p1670_p5), %v1207_v62 }
 0x3f1   : > { %1163 = vst [vmem:[%s454_s21 + $0x18] sm:$0xff] %v1159_v60 }
 0x3f2   : > { %1162 = vst [vmem:[%s454_s21 + $0x10] sm:$0xff] %v1158_v61 }
 0x3f8   : > { %v1213_v1 = vld [vmem:[%s454_s21 + $0x18] sm:$0xff] }
 0x3f9   : > { %v1211_v14 = vld [vmem:[%s454_s21 + $0x10] sm:$0xff]  ;;  %1214 = vst [vmem:[%s1173_s13 + $0x28] sm:$0xff] %v1213_v1 }
 0x3fa   : > { %1212 = vst [vmem:[%s1173_s13 + $0x20] sm:$0xff] %v1211_v14 }
 0x3fb PF: > { %p19_p10 = scmp.ge.s32.totalorder %s1658_s25, 4   ;;  %s1954_s21 = smov %s1565_s22 }
 0x3fc   : > { %s1955_s22 = smov %s1668_s28  ;;  %s1956_s23 = smov %s1658_s25 }
 0x3fd   :  { %21 = sbr.rel (!%p19_p10) target bundleno = 2 (0x2), region = 179 }

</bundles_post_ra>
